<compile_context>
chip_gen: v6e
topology: v6e:2x2x1
jax: 0.10.0
libtpu: 0.0.40
codegen_flags: <defaults>
</compile_context>

<pallas_src>
import functools
import math

import jax
import jax.numpy as jnp
from jax.experimental import pallas as pl
from jax.experimental.pallas import tpu as pltpu


def _round_up(x: int, m: int) -> int:
    return (x + m - 1) // m * m


def _vmem_capacity_bytes() -> int:
    """On-chip VMEM capacity; conservative fallback = v7x (64 MiB per TC)."""
    try:
        info = pltpu.get_tpu_info()
        cap = getattr(info, "vmem_capacity_bytes", None)
        if cap:
            return int(cap)
    except Exception:
        pass
    return 64 * 1024 * 1024


def _choose_t_step(num_tokens: int, d_model: int, itemsize: int,
                   block_tokens: int) -> int:
    """Tokens per grid step: multiple of 8, VMEM-budgeted, and dividing
    num_tokens when possible (avoids padded tail + extra output slice copy)."""
    t = _round_up(min(block_tokens, num_tokens), 8)
    # Gather path holds ~4 tiles of (t, d_model): double-buffered output +
    # 2-slot gather scratch.  Keep it well under v5e's 16 MiB scoped default.
    max_bytes = 12 * 1024 * 1024
    cap = max(8, (max_bytes // (4 * d_model * itemsize)) // 8 * 8)
    t = min(t, cap)
    if num_tokens % 8 == 0:
        d = t
        while d >= 8 and num_tokens % d != 0:
            d -= 8
        if d >= 8:
            t = d
    return t


# ---------------------------------------------------------------------------
# Path 1: table resident in VMEM -> in-VMEM dynamic row gather.
# ---------------------------------------------------------------------------
def _make_resident_kernel(tokens_per_step: int, scale: float):
    def kernel(ids_ref, emb_ref, out_ref):
        # ids_ref: (num_padded,) int32 in SMEM (scalar prefetch, pre-clamped)
        # emb_ref: (vocab, d_model) table, whole thing resident in VMEM
        # out_ref: (T, d_model) VMEM output tile
        base = pl.program_id(0) * tokens_per_step
        for t in range(tokens_per_step):
            row = ids_ref[base + t]
            vec = emb_ref[pl.ds(row, 1), :]
            # Scale on the VPU; keep the table's dtype (matches nn.Embedding).
            out_ref[pl.ds(t, 1), :] = (vec * scale).astype(out_ref.dtype)

    return kernel


# ---------------------------------------------------------------------------
# Path 2: table in HBM -> per-row DMA gather, double-buffered across steps.
# ---------------------------------------------------------------------------
def _make_gather_kernel(tokens_per_step: int, scale: float):
    T = tokens_per_step

    def kernel(ids_ref, emb_hbm, out_ref, rows_vmem, sems):
        # ids_ref:   (num_padded,) int32 in SMEM (scalar prefetch, pre-clamped)
        # emb_hbm:   (vocab, d_model) raw HBM ref (memory_space=pl.ANY)
        # out_ref:   (T, d_model) VMEM output tile
        # rows_vmem: (2, T, d_model) two-slot gather scratch
        # sems:      (2,) DMA semaphores, one per slot
        i = pl.program_id(0)
        n = pl.num_programs(0)
        slot = i % 2

        def issue(step, slot_idx):
            # Issue all T single-row DMAs for `step` into slot `slot_idx`.
            # All ids are read from SMEM here, i.e. before any .wait() below
            # (keeps sst->sld forwarding intact).
            base = step * T
            for t in range(T):
                row = ids_ref[base + t]
                pltpu.make_async_copy(
                    emb_hbm.at[pl.ds(row, 1), :],
                    rows_vmem.at[slot_idx, pl.ds(t, 1), :],
                    sems.at[slot_idx],
                ).start()

        # Prime the pipeline: nobody prefetched step 0's rows.
        @pl.when(i == 0)
        def _():
            issue(0, 0)

        # Prefetch step i+1's rows into the other slot BEFORE waiting on ours,
        # so the next step's gather latency is hidden behind this step's work
        # and the pipelined output writeback.
        @pl.when(i + 1 < n)
        def _():
            issue(i + 1, 1 - slot)

        # Wait for this step's T row copies (they all signaled sems[slot]).
        for t in range(T):
            pltpu.make_async_copy(
                emb_hbm.at[pl.ds(0, 1), :],
                rows_vmem.at[slot, pl.ds(t, 1), :],
                sems.at[slot],
            ).wait()

        # Scale on the VPU; keep the table's dtype (matches nn.Embedding).
        out_ref[...] = (rows_vmem[slot] * scale).astype(out_ref.dtype)

    return kernel


# ---------------------------------------------------------------------------
# Wrapper
# ---------------------------------------------------------------------------
def _embed_flat(ids_flat, emb_table, *, block_tokens, force_hbm_gather):
    num_tokens = ids_flat.shape[0]
    vocab_size, d_model = emb_table.shape
    out_dtype = emb_table.dtype
    itemsize = jnp.dtype(out_dtype).itemsize
    scale = math.sqrt(d_model)

    t_step = _choose_t_step(num_tokens, d_model, itemsize, block_tokens)
    num_padded = _round_up(num_tokens, t_step)
    grid = (num_padded // t_step,)

    # OOB guard hoisted out of the kernel (one fused XLA op); padded tail ids
    # are 0 (always in range) and their output rows are sliced off.
    ids_flat = jnp.clip(ids_flat.astype(jnp.int32), 0, vocab_size - 1)
    if num_padded != num_tokens:
        ids_flat = jnp.pad(ids_flat, (0, num_padded - num_tokens))

    table_bytes = vocab_size * d_model * itemsize
    out_tile_bytes = t_step * d_model * itemsize
    vmem_cap = _vmem_capacity_bytes()
    # Budget assuming the pipeline double-buffers both the (constant-index)
    # table block and the output tile.
    resident_need = 2 * table_bytes + 2 * out_tile_bytes + (1 << 20)
    use_resident = (not force_hbm_gather) and resident_need <= int(0.8 * vmem_cap)

    if use_resident:
        kernel = _make_resident_kernel(t_step, scale)
        grid_spec = pltpu.PrefetchScalarGridSpec(
            num_scalar_prefetch=1,                       # ids -> SMEM before grid
            grid=grid,
            in_specs=[pl.BlockSpec((vocab_size, d_model), lambda i, ids: (0, 0))],
            out_specs=pl.BlockSpec((t_step, d_model), lambda i, ids: (i, 0)),
        )
        vmem_limit = None
        if resident_need > (16 << 20):
            vmem_limit = min(int(0.9 * vmem_cap), resident_need + (8 << 20))
        # Independent steps -> "parallel".
        # TODO(synk): on v7x, evaluate pltpu.CORE_PARALLEL to force 2-TC sharding.
        params = pltpu.CompilerParams(dimension_semantics=("parallel",),
                                      vmem_limit_bytes=vmem_limit)
    else:
        # TODO(synk): for bf16/int8 tables, bitcast rows to 32-bit containers
        # (pltpu.bitcast) so the per-row gather DMAs stay lane/sublane dense.
        kernel = _make_gather_kernel(t_step, scale)
        grid_spec = pltpu.PrefetchScalarGridSpec(
            num_scalar_prefetch=1,
            grid=grid,
            in_specs=[pl.BlockSpec(memory_space=pl.ANY)],   # table stays in HBM
            out_specs=pl.BlockSpec((t_step, d_model), lambda i, ids: (i, 0)),
            scratch_shapes=[
                pltpu.VMEM((2, t_step, d_model), out_dtype),  # 2-slot gather buf
                pltpu.SemaphoreType.DMA((2,)),                # one sem per slot
            ],
        )
        # Cross-step prefetch carries state between steps -> must stay in-order.
        params = pltpu.CompilerParams(dimension_semantics=("arbitrary",))

    out_flat = pl.pallas_call(
        kernel,
        out_shape=jax.ShapeDtypeStruct((num_padded, d_model), out_dtype),
        grid_spec=grid_spec,
        compiler_params=params,
    )(ids_flat, emb_table)

    if num_padded != num_tokens:
        out_flat = out_flat[:num_tokens]
    return out_flat


_MAX_PREFETCH_TOKENS = 32 * 1024   # SMEM ids array pads to next_pow2(4N) bytes


def input_embeddings(token_ids: jax.Array, emb_table: jax.Array,
                     *, block_tokens: int = 128,
                     force_hbm_gather: bool = False) -> jax.Array:
    """Pallas equivalent of InputEmbeddings.forward.

    token_ids: integer array, any shape (e.g. (batch, seq))
    emb_table: (vocab_size, d_model)
    returns:   token_ids.shape + (d_model,), same dtype as emb_table
    """
    _, d_model = emb_table.shape
    lead_shape = token_ids.shape
    ids_all = token_ids.reshape(-1)
    num_tokens = ids_all.shape[0]

    embed = functools.partial(_embed_flat, emb_table=emb_table,
                              block_tokens=block_tokens,
                              force_hbm_gather=force_hbm_gather)
    if num_tokens <= _MAX_PREFETCH_TOKENS:
        out_flat = embed(ids_all)
    else:
        # Chunk over token super-blocks so the scalar-prefetched ids never
        # exhaust SMEM at training-scale batch*seq.
        out_flat = jnp.concatenate(
            [embed(ids_all[s:s + _MAX_PREFETCH_TOKENS])
             for s in range(0, num_tokens, _MAX_PREFETCH_TOKENS)], axis=0)

    return out_flat.reshape(lead_shape + (d_model,))


if __name__ == "__main__":
    # Small, module-consistent shapes.
    batch, seq = 2, 8
    d_model, vocab_size = 128, 64

    key = jax.random.PRNGKey(0)
    k_emb, k_ids = jax.random.split(key)

    # nn.Embedding default init: N(0, 1). Deterministic synthetic weights.
    emb_table = jax.random.normal(k_emb, (vocab_size, d_model), dtype=jnp.float32)
    token_ids = jax.random.randint(k_ids, (batch, seq), 0, vocab_size,
                                   dtype=jnp.int32)

    # Reference in plain JAX (same semantics as the PyTorch module).
    ref = jnp.take(emb_table, token_ids, axis=0) * math.sqrt(d_model)

    # Fast path: table resident in VMEM (what this small table hits).
    # block_tokens=8 -> 2 grid steps, exercising the multi-step pipeline.
    out = input_embeddings(token_ids, emb_table, block_tokens=8)
    out = jax.block_until_ready(out)
    assert out.shape == (batch, seq, d_model)
    assert out.dtype == emb_table.dtype
    assert jnp.allclose(out, ref, atol=1e-5, rtol=1e-5)

    # Large-table path: HBM table + double-buffered per-row DMA gather
    # (forced here so both code paths are exercised at small shapes).
    out_g = input_embeddings(token_ids, emb_table, block_tokens=8,
                             force_hbm_gather=True)
    out_g = jax.block_until_ready(out_g)
    assert jnp.allclose(out_g, ref, atol=1e-5, rtol=1e-5)

    print("KERNEL_OK")
</pallas_src>

<mosaic_0001>
module attributes {stable_mosaic.version = 11 : i64} {
  func.func @kernel(%arg0: i32, %arg1: memref<16xi32, #tpu.memory_space<smem>>, %arg2: memref<64x128xf32, #tpu.memory_space<vmem>>, %arg3: memref<8x128xf32, #tpu.memory_space<vmem>>) attributes {dimension_semantics = [#tpu.dimension_semantics<parallel>], iteration_bounds = array<i64: 2>, scalar_prefetch = 1 : i64, scratch_operands = 0 : i64, tpu.core_type = #tpu.core_type<tc>, window_params = [{pipeline_mode = #tpu.pipeline_mode<synchronous>, transform_indices = @transform_0, window_bounds = array<i64: 64, 128>}, {transform_indices = @transform_1, window_bounds = array<i64: 8, 128>}]} {
    %c8_i32 = arith.constant 8 : i32
    %0 = arith.muli %arg0, %c8_i32 : i32
    %c0_i32 = arith.constant 0 : i32
    %1 = arith.addi %0, %c0_i32 : i32
    %2 = arith.index_cast %1 : i32 to index
    %3 = memref.load %arg1[%2] : memref<16xi32, #tpu.memory_space<smem>>
    %4 = arith.index_cast %3 : i32 to index
    %c0 = arith.constant 0 : index
    %5 = vector.load %arg2[%4, %c0] : memref<64x128xf32, #tpu.memory_space<vmem>>, vector<1x128xf32>
    %cst = arith.constant 11.3137083 : f32
    %6 = vector.broadcast %cst : f32 to vector<1x128xf32>
    %7 = arith.mulf %5, %6 : vector<1x128xf32>
    %c0_0 = arith.constant 0 : index
    %c0_1 = arith.constant 0 : index
    %8 = vector.load %arg3[%c0_0, %c0_1] : memref<8x128xf32, #tpu.memory_space<vmem>>, vector<1x128xf32>
    tpu.vector_store %arg3[%c0_0, %c0_1], %7 {strides = array<i32>} : memref<8x128xf32, #tpu.memory_space<vmem>>, vector<1x128xf32>,
    %c1_i32 = arith.constant 1 : i32
    %9 = arith.addi %0, %c1_i32 : i32
    %10 = arith.index_cast %9 : i32 to index
    %11 = memref.load %arg1[%10] : memref<16xi32, #tpu.memory_space<smem>>
    %12 = arith.index_cast %11 : i32 to index
    %c0_2 = arith.constant 0 : index
    %13 = vector.load %arg2[%12, %c0_2] : memref<64x128xf32, #tpu.memory_space<vmem>>, vector<1x128xf32>
    %cst_3 = arith.constant 11.3137083 : f32
    %14 = vector.broadcast %cst_3 : f32 to vector<1x128xf32>
    %15 = arith.mulf %13, %14 : vector<1x128xf32>
    %c1 = arith.constant 1 : index
    %c0_4 = arith.constant 0 : index
    %16 = vector.load %arg3[%c1, %c0_4] : memref<8x128xf32, #tpu.memory_space<vmem>>, vector<1x128xf32>
    tpu.vector_store %arg3[%c1, %c0_4], %15 {strides = array<i32>} : memref<8x128xf32, #tpu.memory_space<vmem>>, vector<1x128xf32>,
    %c2_i32 = arith.constant 2 : i32
    %17 = arith.addi %0, %c2_i32 : i32
    %18 = arith.index_cast %17 : i32 to index
    %19 = memref.load %arg1[%18] : memref<16xi32, #tpu.memory_space<smem>>
    %20 = arith.index_cast %19 : i32 to index
    %c0_5 = arith.constant 0 : index
    %21 = vector.load %arg2[%20, %c0_5] : memref<64x128xf32, #tpu.memory_space<vmem>>, vector<1x128xf32>
    %cst_6 = arith.constant 11.3137083 : f32
    %22 = vector.broadcast %cst_6 : f32 to vector<1x128xf32>
    %23 = arith.mulf %21, %22 : vector<1x128xf32>
    %c2 = arith.constant 2 : index
    %c0_7 = arith.constant 0 : index
    %24 = vector.load %arg3[%c2, %c0_7] : memref<8x128xf32, #tpu.memory_space<vmem>>, vector<1x128xf32>
    tpu.vector_store %arg3[%c2, %c0_7], %23 {strides = array<i32>} : memref<8x128xf32, #tpu.memory_space<vmem>>, vector<1x128xf32>,
    %c3_i32 = arith.constant 3 : i32
    %25 = arith.addi %0, %c3_i32 : i32
    %26 = arith.index_cast %25 : i32 to index
    %27 = memref.load %arg1[%26] : memref<16xi32, #tpu.memory_space<smem>>
    %28 = arith.index_cast %27 : i32 to index
    %c0_8 = arith.constant 0 : index
    %29 = vector.load %arg2[%28, %c0_8] : memref<64x128xf32, #tpu.memory_space<vmem>>, vector<1x128xf32>
    %cst_9 = arith.constant 11.3137083 : f32
    %30 = vector.broadcast %cst_9 : f32 to vector<1x128xf32>
    %31 = arith.mulf %29, %30 : vector<1x128xf32>
    %c3 = arith.constant 3 : index
    %c0_10 = arith.constant 0 : index
    %32 = vector.load %arg3[%c3, %c0_10] : memref<8x128xf32, #tpu.memory_space<vmem>>, vector<1x128xf32>
    tpu.vector_store %arg3[%c3, %c0_10], %31 {strides = array<i32>} : memref<8x128xf32, #tpu.memory_space<vmem>>, vector<1x128xf32>,
    %c4_i32 = arith.constant 4 : i32
    %33 = arith.addi %0, %c4_i32 : i32
    %34 = arith.index_cast %33 : i32 to index
    %35 = memref.load %arg1[%34] : memref<16xi32, #tpu.memory_space<smem>>
    %36 = arith.index_cast %35 : i32 to index
    %c0_11 = arith.constant 0 : index
    %37 = vector.load %arg2[%36, %c0_11] : memref<64x128xf32, #tpu.memory_space<vmem>>, vector<1x128xf32>
    %cst_12 = arith.constant 11.3137083 : f32
    %38 = vector.broadcast %cst_12 : f32 to vector<1x128xf32>
    %39 = arith.mulf %37, %38 : vector<1x128xf32>
    %c4 = arith.constant 4 : index
    %c0_13 = arith.constant 0 : index
    %40 = vector.load %arg3[%c4, %c0_13] : memref<8x128xf32, #tpu.memory_space<vmem>>, vector<1x128xf32>
    tpu.vector_store %arg3[%c4, %c0_13], %39 {strides = array<i32>} : memref<8x128xf32, #tpu.memory_space<vmem>>, vector<1x128xf32>,
    %c5_i32 = arith.constant 5 : i32
    %41 = arith.addi %0, %c5_i32 : i32
    %42 = arith.index_cast %41 : i32 to index
    %43 = memref.load %arg1[%42] : memref<16xi32, #tpu.memory_space<smem>>
    %44 = arith.index_cast %43 : i32 to index
    %c0_14 = arith.constant 0 : index
    %45 = vector.load %arg2[%44, %c0_14] : memref<64x128xf32, #tpu.memory_space<vmem>>, vector<1x128xf32>
    %cst_15 = arith.constant 11.3137083 : f32
    %46 = vector.broadcast %cst_15 : f32 to vector<1x128xf32>
    %47 = arith.mulf %45, %46 : vector<1x128xf32>
    %c5 = arith.constant 5 : index
    %c0_16 = arith.constant 0 : index
    %48 = vector.load %arg3[%c5, %c0_16] : memref<8x128xf32, #tpu.memory_space<vmem>>, vector<1x128xf32>
    tpu.vector_store %arg3[%c5, %c0_16], %47 {strides = array<i32>} : memref<8x128xf32, #tpu.memory_space<vmem>>, vector<1x128xf32>,
    %c6_i32 = arith.constant 6 : i32
    %49 = arith.addi %0, %c6_i32 : i32
    %50 = arith.index_cast %49 : i32 to index
    %51 = memref.load %arg1[%50] : memref<16xi32, #tpu.memory_space<smem>>
    %52 = arith.index_cast %51 : i32 to index
    %c0_17 = arith.constant 0 : index
    %53 = vector.load %arg2[%52, %c0_17] : memref<64x128xf32, #tpu.memory_space<vmem>>, vector<1x128xf32>
    %cst_18 = arith.constant 11.3137083 : f32
    %54 = vector.broadcast %cst_18 : f32 to vector<1x128xf32>
    %55 = arith.mulf %53, %54 : vector<1x128xf32>
    %c6 = arith.constant 6 : index
    %c0_19 = arith.constant 0 : index
    %56 = vector.load %arg3[%c6, %c0_19] : memref<8x128xf32, #tpu.memory_space<vmem>>, vector<1x128xf32>
    tpu.vector_store %arg3[%c6, %c0_19], %55 {strides = array<i32>} : memref<8x128xf32, #tpu.memory_space<vmem>>, vector<1x128xf32>,
    %c7_i32 = arith.constant 7 : i32
    %57 = arith.addi %0, %c7_i32 : i32
    %58 = arith.index_cast %57 : i32 to index
    %59 = memref.load %arg1[%58] : memref<16xi32, #tpu.memory_space<smem>>
    %60 = arith.index_cast %59 : i32 to index
    %c0_20 = arith.constant 0 : index
    %61 = vector.load %arg2[%60, %c0_20] : memref<64x128xf32, #tpu.memory_space<vmem>>, vector<1x128xf32>
    %cst_21 = arith.constant 11.3137083 : f32
    %62 = vector.broadcast %cst_21 : f32 to vector<1x128xf32>
    %63 = arith.mulf %61, %62 : vector<1x128xf32>
    %c7 = arith.constant 7 : index
    %c0_22 = arith.constant 0 : index
    %64 = vector.load %arg3[%c7, %c0_22] : memref<8x128xf32, #tpu.memory_space<vmem>>, vector<1x128xf32>
    tpu.vector_store %arg3[%c7, %c0_22], %63 {strides = array<i32>} : memref<8x128xf32, #tpu.memory_space<vmem>>, vector<1x128xf32>,
    return
  }
  func.func @transform_0(%arg0: i32, %arg1: memref<16xi32, #tpu.memory_space<smem>>) -> (i32, i32) {
    %c0_i32 = arith.constant 0 : i32
    %c0_i32_0 = arith.constant 0 : i32
    %c0_i32_1 = arith.constant 0 : i32
    return %c0_i32, %c0_i32_0 : i32, i32
  }
  func.func @transform_1(%arg0: i32, %arg1: memref<16xi32, #tpu.memory_space<smem>>) -> (i32, i32) {
    %c0_i32 = arith.constant 0 : i32
    %c0_i32_0 = arith.constant 0 : i32
    return %arg0, %c0_i32 : i32, i32
  }
}

</mosaic_0001>

<bundles_post_ra>
// kernel: tpu_custom_call.1
= control target key start
LH: loop header
LB: loop body
LE: loop exit
PB: predicated region body
PF: predicated region fallthrough
CT: control target
= control target key end

     0   :  { %s410_s9 = smov [#allocation3]   ;;  %s555_s0 = inlined_call_operand.hbm [shape: s32[16], index: 0, kind: input, shape index: {}]   ;;  %s556_s1 = inlined_call_operand.hbm [shape: f32[64,128], index: 1, kind: input, shape index: {}]   ;;  %s557_s2 = inlined_call_operand.hbm [shape: f32[16,128], index: 2, kind: output, shape index: {}]  }
   0x1   :  { %8 = dma.hbm_to_smem %s555_s0, 16, %s410_s9, [#allocation2] }
   0x2   :  { %384 = dma.done.wait [#allocation2], 16 }
   0x3   :  { %385 = vsyncadd [#allocation2], 4294967280 }
   0x4   :  { %10 = sfence }
   0x5   :  { %11 = vsyncpa [#allocation5], 0 }
   0x6   :  { %12 = vsyncpa [#allocation6], 0 }
   0x7   :  { %14 = vsyncpa [#allocation6 + $0x1], 0  ;;  %s433_s12 = smov 0   ;;  %s435_s13 = smov 0  }
   0x8   :  { %s437_s14 = smov 0   ;;  %s439_s15 = smov 0  }
   0x9 LB: > { %s454_s0 = sadd.s32 4294967295, %s408_s15   ;;  %s244_s16 = sadd.s32 4294967294, %s408_s15   ;;  %s408_s15 = sphi %s439_s15, %s565_s15   ;;  %s404_s14 = sphi %s437_s14, %s564_s14   ;;  %s400_s13 = sphi %s435_s13, %s563_s13   ;;  %s396_s12 = sphi %s433_s12, %s562_s12  }
   0xa   : > { %s458_s17 = sadd.s32 1, %s408_s15   ;;  %s48_s18 = sadd.s32 1, %s404_s14 }
   0xb   : > { %s45_s19 = ssub.s32 %s408_s15, %s458_s17  ;;  %p58_p0 = scmp.ne.s32.totalorder %s404_s14, %s400_s13 }
   0xc   : > { %p46_p1 = scmp.eq.s32.totalorder %s45_s19, 0  ;;  %p59_p2 = scmp.eq.s32.totalorder %s454_s0, 1 }
   0xd   : > { %p64_p3 = scmp.ne.s32.totalorder %s400_s13, %s396_s12  ;;  %p65_p4 = scmp.eq.s32.totalorder %s244_s16, 1 }
   0xe   : > { %s469_s20 = scalar_select %p46_p1, %s404_s14, %s48_s18  }
   0xf   : > { %p471_p5 = por %p59_p2, %p58_p0  ;;  %p475_p6 = por %p65_p4, %p64_p3 }
  0x10   : > { %p245_p7 = scmp.ge.s32.totalorder %s408_s15, 1  ;;  %p72_p8 = scmp.lt.s32.totalorder %s408_s15, 3 }
  0x11   : > { %s559_s22 = scalar_select %p475_p6, 1, 0 }
  0x12   : > { %p269_p9 = scmp.eq.s32.totalorder %s454_s0, 0  ;;  %p482_p10 = pnand %p245_p7, %p72_p8 }
  0x13   : > { %s411_s24 = smov [#allocation4]  }
  0x14   : > { %s84_s25 = sshll.u32 %s411_s24, 4  ;;  %p261_p11 = pneg %p482_p10  ;;  %s85_s25 = int_to_ptr.vmem [resolvable:$true] %s84_s25 }
  0x15   : > { %s327_s26 = scalar_lea.vmem %s85_s25, 1024  ;;  %p335_p3 = scmp.lt.s32.totalorder %s85_s25, %s85_s25 }
  0x16   : > { %p262_p12 = pnand %p269_p9, %p261_p11  ;;  %p328_p0 = scmp.ne.s32.totalorder %s85_s25, %s327_s26 }
  0x17   : > { %p336_p4 = scmp.lt.s32.totalorder %s327_s26, %s327_s26 }
  0x18   : > { %p318_p13 = pneg %p262_p12 }
  0x19   : > { %p337_p6 = por %p336_p4, %p335_p3 }
  0x1a   : > { %p330_p1 = pnand %p328_p0, %p318_p13 }
  0x1c   : > { %p331_p2 = pneg %p330_p1 }
  0x1e   : > { %p338_p7 = pnand %p337_p6, %p331_p2 }
  0x20   : > { %341 = shalt.err (!%p338_p7)
}
  0x21   : > { %s412_s27 = smov 128   ;;  %s413_s28 = smov 8  }
  0x22   : > { %264 = dma.hbm_to_vmem [thread:$0]  (!%p262_p12), %s556_s1, 1024, %s85_s25, [#allocation5], %s412_s27, %s412_s27, %s413_s28  }
  0x23   : > { %100 = sbr.rel (%p482_p10) target bundleno = 81 (0x51), region = 24 }
  0x28   : > { %387 = dma.done.wait (%p269_p9), [#allocation5], 1024  }
  0x29   : > { %389 = vsyncadd (%p269_p9), [#allocation5], 4294966272  ;;  %s112_s3 = sand.u32 1, %s400_s13   ;;  %s250_s4 = sshll.u32 %s454_s0, 3 }
  0x2a   : > { %s249_s5 = sshll.u32 %s112_s3, 3  ;;  %s116_s6 = sld [smem:[#allocation3 + %s250_s4]] }
  0x2b   : > { %s121_s7 = sadd.s32 1, %s250_s4  ;;  %s127_s8 = sadd.s32 2, %s250_s4 }
  0x2c   : > { %s122_s9 = sld [smem:[#allocation3 + %s121_s7]]  ;;  %s133_s10 = sadd.s32 3, %s250_s4 }
  0x2d   : > { %s128_s11 = sld [smem:[#allocation3 + %s127_s8]]  ;;  %s139_s16 = sadd.s32 4, %s250_s4 }
  0x2e   : > { %s134_s18 = sld [smem:[#allocation3 + %s133_s10]]  ;;  %s145_s19 = sadd.s32 5, %s250_s4 }
  0x2f   : > { %s140_s23 = sld [smem:[#allocation3 + %s139_s16]]  ;;  %s151_s26 = sadd.s32 6, %s250_s4 }
  0x30   : > { %s117_s24 = scalar_lea.vmem [#allocation4], %s116_s6  ;;  %s146_s25 = sld [smem:[#allocation3 + %s145_s19]] }
  0x31   : > { %v118_v0 = vld [vmem:[%s117_s24] sm:$0x1]  ;;  %s152_s27 = sld [smem:[#allocation3 + %s151_s26]]  ;;  %s157_s28 = sadd.s32 7, %s250_s4 }
  0x32   : > { %v119_v1 = vmul.f32 11.313708, %v118_v0  ;;  %s158_s29 = sld [smem:[#allocation3 + %s157_s28]]  ;;  %s503_s30 = scalar_lea.vmem [#allocation7], %s249_s5 }
  0x33   : > { %s123_s7 = scalar_lea.vmem [#allocation4], %s122_s9  ;;  %s129_s6 = scalar_lea.vmem [#allocation4], %s128_s11 }
  0x34   : > { %120 = vst [vmem:[%s503_s30] sm:$0x1] %v119_v1  ;;  %v124_v2 = vld [vmem:[%s123_s7] sm:$0x1]  ;;  %s135_s8 = scalar_lea.vmem [#allocation4], %s134_s18  ;;  %s252_s5 = sshll.u32 %s454_s0, 7 }
  0x35   : > { %v125_v3 = vmul.f32 11.313708, %v124_v2  ;;  %v130_v4 = vld [vmem:[%s129_s6] sm:$0x1]  ;;  %s141_s4 = scalar_lea.vmem [#allocation4], %s140_s23  ;;  %s177_s10 = sshll.u32 %s503_s30, 4  ;;  %s178_s10 = int_to_ptr.vmem [resolvable:$true] %s177_s10 }
  0x36   : > { %v131_v5 = vmul.f32 11.313708, %v130_v4  ;;  %v136_v6 = vld [vmem:[%s135_s8] sm:$0x1]  ;;  %s147_s9 = scalar_lea.vmem [#allocation4], %s146_s25  ;;  %s516_s19 = scalar_lea.hbm %s557_s2, %s252_s5 }
  0x37   : > { %126 = vst [vmem:[%s503_s30 + $0x1] sm:$0x1] %v125_v3  ;;  %v137_v7 = vmul.f32 11.313708, %v136_v6  ;;  %v142_v8 = vld [vmem:[%s141_s4] sm:$0x1] }
  0x38   : > { %132 = vst [vmem:[%s503_s30 + $0x2] sm:$0x1] %v131_v5  ;;  %v143_v9 = vmul.f32 11.313708, %v142_v8  ;;  %v148_v10 = vld [vmem:[%s147_s9] sm:$0x1] }
  0x39   : > { %138 = vst [vmem:[%s503_s30 + $0x3] sm:$0x1] %v137_v7  ;;  %v149_v11 = vmul.f32 11.313708, %v148_v10  ;;  %s153_s11 = scalar_lea.vmem [#allocation4], %s152_s27  ;;  %s159_s16 = scalar_lea.vmem [#allocation4], %s158_s29 }
  0x3a   : > { %v154_v12 = vld [vmem:[%s153_s11] sm:$0x1]  ;;  %144 = vst [vmem:[%s503_s30 + $0x4] sm:$0x1] %v143_v9  ;;  %s164_s23 = scalar_lea.sflag [#allocation6], %s112_s3  ;;  %s342_s24 = scalar_lea.vmem %s178_s10, 128 }
  0x3b   : > { %v155_v13 = vmul.f32 11.313708, %v154_v12  ;;  %v160_v14 = vld [vmem:[%s159_s16] sm:$0x1]  ;;  %150 = vst [vmem:[%s503_s30 + $0x5] sm:$0x1] %v149_v11  ;;  %p343_p6 = scmp.ne.s32.totalorder %s178_s10, %s342_s24 }
  0x3c   : > { %v161_v15 = vmul.f32 11.313708, %v160_v14  ;;  %s414_s25 = smov [#allocation7]  }
  0x3d   : > { %156 = vst [vmem:[%s503_s30 + $0x6] sm:$0x1] %v155_v13  ;;  %p344_p8 = pnand %p343_p6, %p471_p5  ;;  %s346_s26 = sshll.u32 %s414_s25, 4  ;;  %s347_s26 = int_to_ptr.vmem [resolvable:$false] %s346_s26 }
  0x3e   : > { %162 = vst [vmem:[%s503_s30 + $0x7] sm:$0x1] %v161_v15  ;;  %s348_s27 = scalar_lea.vmem %s347_s26, 256  ;;  %p349_p10 = scmp.lt.s32.totalorder %s178_s10, %s347_s26 }
  0x3f   : > { %p345_p9 = pneg %p344_p8  ;;  %p350_p11 = scmp.lt.s32.totalorder %s348_s27, %s342_s24 }
  0x41   : > { %p351_p12 = por %p350_p11, %p349_p10 }
  0x43   : > { %p352_p13 = pnand %p351_p12, %p345_p9 }
  0x45   : > { %355 = shalt.err (!%p352_p13)
}
  0x46   : > { %s356_s28 = scalar_lea.hbm %s516_s19, 128  ;;  %s360_s30 = scalar_lea.hbm %s557_s2, 256 }
  0x47   : > { %p357_p0 = scmp.ne.s32.totalorder %s516_s19, %s356_s28  ;;  %p361_p3 = scmp.lt.s32.totalorder %s516_s19, %s557_s2 }
  0x48   : > { %p362_p4 = scmp.lt.s32.totalorder %s360_s30, %s356_s28 }
  0x49   : > { %p358_p1 = pnand %p357_p0, %p471_p5 }
  0x4a   : > { %p363_p7 = por %p362_p4, %p361_p3 }
  0x4b   : > { %p359_p2 = pneg %p358_p1 }
  0x4d   : > { %p364_p6 = pnand %p363_p7, %p359_p2 }
  0x4f   : > { %367 = shalt.err (!%p364_p6)
}
  0x50   : > { %259 = dma.vmem_to_hbm [thread:$0]  (%p471_p5), %s178_s10, 128, %s516_s19, %s164_s23  }
  0x51 PF: > { %p271_p8 = scmp.ge.s32.totalorder %s408_s15, 2  ;;  %s189_s8 = sand.u32 1, %s396_s12  }
  0x52   : > { %p561_p9 = scmp.ne.s32.totalorder %s559_s22, 0  ;;  %s190_s4 = scalar_lea.sflag [#allocation6], %s189_s8 }
  0x54   : > { %p266_p10 = pnand %p271_p8, %p561_p9 }
  0x56   : > { %p267_p11 = pneg %p266_p10 }
  0x58   : > { %391 = dma.done.wait (%p267_p11), %s190_s4, 128  }
  0x59   : > { %393 = vsyncadd (%p267_p11), %s190_s4, 4294967168  ;;  %p17_p12 = scmp.ge.s32.totalorder %s458_s17, 4   ;;  %s562_s12 = smov %s400_s13 }
  0x5a   : > { %s563_s13 = smov %s404_s14  ;;  %s564_s14 = smov %s469_s20 }
  0x5b   : > { %s565_s15 = smov %s458_s17  ;;  %19 = sbr.rel (!%p17_p12) target bundleno = 9 (0x9), region = 69 }
  0x60   :  { %195 = vsyncpa [#allocation5], 1 }
  0x61   :  { %197 = vsyncpa [#allocation5 + $0x1], 1 }
  0x62   :  { %198 = vsyncpa [#allocation6], 1 }
  0x63   :  { %200 = vsyncpa [#allocation6 + $0x1], 1 }

</bundles_post_ra>
